<compile_context>
chip_gen: v5e
topology: v5e:2x2
jax: 0.10.0
libtpu: 0.0.40
codegen_flags: <defaults>
</compile_context>

<pallas_src>
import functools

import jax
import jax.numpy as jnp
from jax import lax
from jax.experimental import pallas as pl
from jax.experimental.pallas import tpu as pltpu


def _dice_count_kernel(logits_ref, labels_ref, tp_ref, pred_ref, true_ref,
                       *, n_classes, tile_rows, pixels_per_image, mask_needed):
    p = pl.program_id(1)  # pixel-row-tile index within the image

    # Per-batch output blocks are resident across the (arbitrary) pixel axis;
    # zero them on the first pixel tile of every image.
    @pl.when(p == 0)
    def _init():
        tp_ref[...] = jnp.zeros_like(tp_ref)
        pred_ref[...] = jnp.zeros_like(pred_ref)
        true_ref[...] = jnp.zeros_like(true_ref)

    # Running argmax over the (small, static) class axis, unrolled: dense
    # (tile_rows, 128) VPU work.  Strict '>' keeps the first maximal index
    # (torch.max / argmax tie-break).
    best_val = logits_ref[0, 0]                        # (tile_rows, 128)
    best_idx = jnp.zeros(best_val.shape, jnp.int32)
    for cc in range(1, n_classes):
        v = logits_ref[0, cc]
        better = v > best_val
        best_val = jnp.where(better, v, best_val)
        best_idx = jnp.where(better, jnp.int32(cc), best_idx)

    labels = labels_ref[0, 0].astype(jnp.int32)        # (tile_rows, 128)

    if mask_needed:
        # Ragged tail (pixels not a multiple of the tile, or wrapper padding):
        # send invalid pixels to class -1 so they match no class anywhere.
        row = lax.broadcasted_iota(jnp.int32, labels.shape, 0)
        lane = lax.broadcasted_iota(jnp.int32, labels.shape, 1)
        flat = (p * tile_rows + row) * 128 + lane
        valid = flat < pixels_per_image
        best_idx = jnp.where(valid, best_idx, -1)
        labels = jnp.where(valid, labels, -1)

    # Per-class one-hot counting with compare-against-constant (no class iota),
    # sublane-reduced to (1, 128) per class; the cross-lane finish happens once
    # in the wrapper on tiny (N, C, 128) arrays.
    tp_rows, pred_rows, true_rows = [], [], []
    for cc in range(n_classes):
        pred_c = best_idx == cc
        true_c = labels == cc
        tp_c = jnp.logical_and(pred_c, true_c)
        tp_rows.append(jnp.sum(tp_c.astype(jnp.int32), axis=0, keepdims=True))
        pred_rows.append(jnp.sum(pred_c.astype(jnp.int32), axis=0, keepdims=True))
        true_rows.append(jnp.sum(true_c.astype(jnp.int32), axis=0, keepdims=True))

    tp_ref[0] += jnp.concatenate(tp_rows, axis=0)       # (C, 128)
    pred_ref[0] += jnp.concatenate(pred_rows, axis=0)
    true_ref[0] += jnp.concatenate(true_rows, axis=0)


def segmentation_dice_coefficient(true_masks, out, *,
                                  max_tile_rows=2048,
                                  vmem_limit_bytes=32 * 1024 * 1024):
    """true_masks: (N, H, W) int labels;  out: (N, C, H, W) logits (any float dtype).

    Returns dice coefficients, shape (C,), float32 (NaN for classes absent in
    both prediction and ground truth, matching the PyTorch reference).
    """
    n, c, h, w = out.shape
    p_img = h * w

    labels = true_masks
    if labels.dtype != jnp.int32:
        labels = labels.astype(jnp.int32)

    # Put pixels on (rows, 128) sub-blocks.  For typical segmentation shapes
    # H*W is a multiple of 128 and this is a free reshape of the contiguous
    # last axis (NCHW stays in its native HBM layout).
    logits_flat = out.reshape(n, c, p_img)
    labels_flat = labels.reshape(n, 1, p_img)
    if p_img % 128 != 0:
        # Rare path: one extra HBM pass to pad the pixel axis up to 128; padded
        # pixels are masked out inside the kernel.
        pad = (-p_img) % 128
        logits_flat = jnp.pad(logits_flat, ((0, 0), (0, 0), (0, pad)))
        labels_flat = jnp.pad(labels_flat, ((0, 0), (0, 0), (0, pad)),
                              constant_values=-1)
        p_pad = p_img + pad
    else:
        p_pad = p_img

    r_img = p_pad // 128
    logits4 = logits_flat.reshape(n, c, r_img, 128)
    labels4 = labels_flat.reshape(n, 1, r_img, 128)

    # Tile sizing: largest row-tile (multiple of 8) such that double-buffered
    # inputs plus argmax / one-hot temporaries fit comfortably inside the
    # scoped-VMEM budget we request below (safe on v5e/v6e/v7x).
    logit_bytes = jnp.dtype(out.dtype).itemsize
    label_bytes = jnp.dtype(labels.dtype).itemsize
    temp_bytes_per_pixel = 8 * 4   # best_val/best_idx + one-hot/cast temporaries
    bytes_per_row = 128 * (2 * (c * logit_bytes + label_bytes)
                           + temp_bytes_per_pixel)
    budget = int(vmem_limit_bytes * 0.75)
    cap = max(8, (budget // bytes_per_row) // 8 * 8)
    cap = min(cap, max_tile_rows)
    tile_rows = r_img if r_img <= cap else cap      # full dim or multiple of 8

    num_p_tiles = pl.cdiv(r_img, tile_rows)
    mask_needed = (p_pad != p_img) or (r_img % tile_rows != 0)

    kernel = functools.partial(_dice_count_kernel,
                               n_classes=c,
                               tile_rows=tile_rows,
                               pixels_per_image=p_img,
                               mask_needed=mask_needed)

    out_struct = jax.ShapeDtypeStruct((n, c, 128), jnp.int32)
    acc_spec = pl.BlockSpec((1, c, 128), lambda b, p: (b, 0, 0))

    tp_cnt, pred_cnt, true_cnt = pl.pallas_call(
        kernel,
        out_shape=(out_struct, out_struct, out_struct),
        grid_spec=pltpu.PrefetchScalarGridSpec(
            num_scalar_prefetch=0,
            grid=(n, num_p_tiles),
            in_specs=[
                pl.BlockSpec((1, c, tile_rows, 128), lambda b, p: (b, 0, p, 0)),
                pl.BlockSpec((1, 1, tile_rows, 128), lambda b, p: (b, 0, p, 0)),
            ],
            out_specs=[acc_spec, acc_spec, acc_spec],
        ),
        compiler_params=pltpu.CompilerParams(
            dimension_semantics=("parallel", "arbitrary"),
            vmem_limit_bytes=vmem_limit_bytes),
    )(logits4, labels4)

    # Tiny host-side combine: sum over batch and lanes, then the dice ratio.
    tp = jnp.sum(tp_cnt, axis=(0, 2)).astype(jnp.float32)
    div = jnp.sum(pred_cnt + true_cnt, axis=(0, 2)).astype(jnp.float32)
    return 2.0 * tp / div       # 0/0 -> NaN, matching the reference


def _reference(true_masks, out):
    n, c, h, w = out.shape
    probs = jnp.transpose(out, (0, 2, 3, 1)).reshape(-1, c)
    pred = jnp.argmax(probs, axis=1)
    true = true_masks.reshape(-1)
    classes = jnp.arange(c)
    tp = jnp.sum((pred[:, None] == classes) & (true[:, None] == classes),
                 axis=0).astype(jnp.float32)
    div = (jnp.sum(pred[:, None] == classes, axis=0)
           + jnp.sum(true[:, None] == classes, axis=0)).astype(jnp.float32)
    return 2.0 * tp / div


if __name__ == "__main__":
    key = jax.random.PRNGKey(0)
    k1, k2 = jax.random.split(key)

    N, C, H, W = 2, 4, 16, 16
    out = jax.random.normal(k1, (N, C, H, W), dtype=jnp.float32)
    true_masks = jax.random.randint(k2, (N, H, W), 0, C, dtype=jnp.int32)

    dice = segmentation_dice_coefficient(true_masks, out)
    dice = jax.block_until_ready(dice)

    ref = _reference(true_masks, out)
    assert dice.shape == (C,)
    assert jnp.allclose(dice, ref, atol=1e-6), (dice, ref)
    print("KERNEL_OK")
</pallas_src>

<mosaic_0001>
module attributes {stable_mosaic.version = 11 : i64} {
  func.func @_dice_count_kernel(%arg0: i32, %arg1: i32, %arg2: memref<1x4x2x128xf32, #tpu.memory_space<vmem>>, %arg3: memref<1x1x2x128xi32, #tpu.memory_space<vmem>>, %arg4: memref<1x4x128xi32, #tpu.memory_space<vmem>>, %arg5: memref<1x4x128xi32, #tpu.memory_space<vmem>>, %arg6: memref<1x4x128xi32, #tpu.memory_space<vmem>>) attributes {dimension_semantics = [#tpu.dimension_semantics<parallel>, #tpu.dimension_semantics<arbitrary>], iteration_bounds = array<i64: 2, 1>, scalar_prefetch = 0 : i64, scratch_operands = 0 : i64, tpu.core_type = #tpu.core_type<tc>, window_params = [{transform_indices = @transform_0, window_bounds = array<i64: 1, 4, 2, 128>}, {transform_indices = @transform_1, window_bounds = array<i64: 1, 1, 2, 128>}, {transform_indices = @transform_2, window_bounds = array<i64: 1, 4, 128>}, {transform_indices = @transform_3, window_bounds = array<i64: 1, 4, 128>}, {transform_indices = @transform_4, window_bounds = array<i64: 1, 4, 128>}]} {
    %c0_i32 = arith.constant 0 : i32
    %0 = arith.cmpi eq, %arg1, %c0_i32 : i32
    %1 = arith.extui %0 : i1 to i32
    %c0_i32_0 = arith.constant 0 : i32
    %2 = arith.cmpi ne, %1, %c0_i32_0 : i32
    scf.if %2 {
      %c0_i32_55 = arith.constant 0 : i32
      %102 = vector.broadcast %c0_i32_55 : i32 to vector<1x4x128xi32>
      %c0_56 = arith.constant 0 : index
      %c0_57 = arith.constant 0 : index
      %c0_58 = arith.constant 0 : index
      %103 = vector.load %arg4[%c0_56, %c0_57, %c0_58] : memref<1x4x128xi32, #tpu.memory_space<vmem>>, vector<1x4x128xi32>
      tpu.vector_store %arg4[%c0_56, %c0_57, %c0_58], %102 {strides = array<i32>} : memref<1x4x128xi32, #tpu.memory_space<vmem>>, vector<1x4x128xi32>,
      %c0_i32_59 = arith.constant 0 : i32
      %104 = vector.broadcast %c0_i32_59 : i32 to vector<1x4x128xi32>
      %c0_60 = arith.constant 0 : index
      %c0_61 = arith.constant 0 : index
      %c0_62 = arith.constant 0 : index
      %105 = vector.load %arg5[%c0_60, %c0_61, %c0_62] : memref<1x4x128xi32, #tpu.memory_space<vmem>>, vector<1x4x128xi32>
      tpu.vector_store %arg5[%c0_60, %c0_61, %c0_62], %104 {strides = array<i32>} : memref<1x4x128xi32, #tpu.memory_space<vmem>>, vector<1x4x128xi32>,
      %c0_i32_63 = arith.constant 0 : i32
      %106 = vector.broadcast %c0_i32_63 : i32 to vector<1x4x128xi32>
      %c0_64 = arith.constant 0 : index
      %c0_65 = arith.constant 0 : index
      %c0_66 = arith.constant 0 : index
      %107 = vector.load %arg6[%c0_64, %c0_65, %c0_66] : memref<1x4x128xi32, #tpu.memory_space<vmem>>, vector<1x4x128xi32>
      tpu.vector_store %arg6[%c0_64, %c0_65, %c0_66], %106 {strides = array<i32>} : memref<1x4x128xi32, #tpu.memory_space<vmem>>, vector<1x4x128xi32>,
    } else {
    }
    %c0 = arith.constant 0 : index
    %c0_1 = arith.constant 0 : index
    %c0_2 = arith.constant 0 : index
    %c0_3 = arith.constant 0 : index
    %3 = vector.load %arg2[%c0, %c0_1, %c0_2, %c0_3] : memref<1x4x2x128xf32, #tpu.memory_space<vmem>>, vector<1x1x2x128xf32>
    %4 = vector.shape_cast %3 : vector<1x1x2x128xf32> to vector<2x128xf32>
    %c0_i32_4 = arith.constant 0 : i32
    %5 = vector.broadcast %c0_i32_4 : i32 to vector<2x128xi32>
    %c0_5 = arith.constant 0 : index
    %c1 = arith.constant 1 : index
    %c0_6 = arith.constant 0 : index
    %c0_7 = arith.constant 0 : index
    %6 = vector.load %arg2[%c0_5, %c1, %c0_6, %c0_7] : memref<1x4x2x128xf32, #tpu.memory_space<vmem>>, vector<1x1x2x128xf32>
    %7 = vector.shape_cast %6 : vector<1x1x2x128xf32> to vector<2x128xf32>
    %8 = arith.cmpf ogt, %7, %4 : vector<2x128xf32>
    %9 = arith.select %8, %7, %4 : vector<2x128xi1>, vector<2x128xf32>
    %c1_i32 = arith.constant 1 : i32
    %10 = vector.broadcast %c1_i32 : i32 to vector<2x128xi32>
    %11 = arith.select %8, %10, %5 : vector<2x128xi1>, vector<2x128xi32>
    %c0_8 = arith.constant 0 : index
    %c2 = arith.constant 2 : index
    %c0_9 = arith.constant 0 : index
    %c0_10 = arith.constant 0 : index
    %12 = vector.load %arg2[%c0_8, %c2, %c0_9, %c0_10] : memref<1x4x2x128xf32, #tpu.memory_space<vmem>>, vector<1x1x2x128xf32>
    %13 = vector.shape_cast %12 : vector<1x1x2x128xf32> to vector<2x128xf32>
    %14 = arith.cmpf ogt, %13, %9 : vector<2x128xf32>
    %15 = arith.select %14, %13, %9 : vector<2x128xi1>, vector<2x128xf32>
    %c2_i32 = arith.constant 2 : i32
    %16 = vector.broadcast %c2_i32 : i32 to vector<2x128xi32>
    %17 = arith.select %14, %16, %11 : vector<2x128xi1>, vector<2x128xi32>
    %c0_11 = arith.constant 0 : index
    %c3 = arith.constant 3 : index
    %c0_12 = arith.constant 0 : index
    %c0_13 = arith.constant 0 : index
    %18 = vector.load %arg2[%c0_11, %c3, %c0_12, %c0_13] : memref<1x4x2x128xf32, #tpu.memory_space<vmem>>, vector<1x1x2x128xf32>
    %19 = vector.shape_cast %18 : vector<1x1x2x128xf32> to vector<2x128xf32>
    %20 = arith.cmpf ogt, %19, %15 : vector<2x128xf32>
    %c3_i32 = arith.constant 3 : i32
    %21 = vector.broadcast %c3_i32 : i32 to vector<2x128xi32>
    %22 = arith.select %20, %21, %17 : vector<2x128xi1>, vector<2x128xi32>
    %c0_14 = arith.constant 0 : index
    %c0_15 = arith.constant 0 : index
    %c0_16 = arith.constant 0 : index
    %c0_17 = arith.constant 0 : index
    %23 = vector.load %arg3[%c0_14, %c0_15, %c0_16, %c0_17] : memref<1x1x2x128xi32, #tpu.memory_space<vmem>>, vector<1x1x2x128xi32>
    %24 = vector.shape_cast %23 : vector<1x1x2x128xi32> to vector<2x128xi32>
    %c0_i32_18 = arith.constant 0 : i32
    %25 = vector.broadcast %c0_i32_18 : i32 to vector<2x128xi32>
    %26 = arith.cmpi eq, %22, %25 : vector<2x128xi32>
    %c0_i32_19 = arith.constant 0 : i32
    %27 = vector.broadcast %c0_i32_19 : i32 to vector<2x128xi32>
    %28 = arith.cmpi eq, %24, %27 : vector<2x128xi32>
    %29 = arith.andi %26, %28 : vector<2x128xi1>
    %30 = arith.extui %29 : vector<2x128xi1> to vector<2x128xi32>
    %cst = arith.constant dense<0> : vector<128xi32>
    %31 = vector.multi_reduction <add>, %30, %cst [0] : vector<2x128xi32> to vector<128xi32>
    %32 = vector.shape_cast %31 : vector<128xi32> to vector<1x128xi32>
    %33 = arith.extui %26 : vector<2x128xi1> to vector<2x128xi32>
    %cst_20 = arith.constant dense<0> : vector<128xi32>
    %34 = vector.multi_reduction <add>, %33, %cst_20 [0] : vector<2x128xi32> to vector<128xi32>
    %35 = vector.shape_cast %34 : vector<128xi32> to vector<1x128xi32>
    %36 = arith.extui %28 : vector<2x128xi1> to vector<2x128xi32>
    %cst_21 = arith.constant dense<0> : vector<128xi32>
    %37 = vector.multi_reduction <add>, %36, %cst_21 [0] : vector<2x128xi32> to vector<128xi32>
    %38 = vector.shape_cast %37 : vector<128xi32> to vector<1x128xi32>
    %c1_i32_22 = arith.constant 1 : i32
    %39 = vector.broadcast %c1_i32_22 : i32 to vector<2x128xi32>
    %40 = arith.cmpi eq, %22, %39 : vector<2x128xi32>
    %c1_i32_23 = arith.constant 1 : i32
    %41 = vector.broadcast %c1_i32_23 : i32 to vector<2x128xi32>
    %42 = arith.cmpi eq, %24, %41 : vector<2x128xi32>
    %43 = arith.andi %40, %42 : vector<2x128xi1>
    %44 = arith.extui %43 : vector<2x128xi1> to vector<2x128xi32>
    %cst_24 = arith.constant dense<0> : vector<128xi32>
    %45 = vector.multi_reduction <add>, %44, %cst_24 [0] : vector<2x128xi32> to vector<128xi32>
    %46 = vector.shape_cast %45 : vector<128xi32> to vector<1x128xi32>
    %47 = arith.extui %40 : vector<2x128xi1> to vector<2x128xi32>
    %cst_25 = arith.constant dense<0> : vector<128xi32>
    %48 = vector.multi_reduction <add>, %47, %cst_25 [0] : vector<2x128xi32> to vector<128xi32>
    %49 = vector.shape_cast %48 : vector<128xi32> to vector<1x128xi32>
    %50 = arith.extui %42 : vector<2x128xi1> to vector<2x128xi32>
    %cst_26 = arith.constant dense<0> : vector<128xi32>
    %51 = vector.multi_reduction <add>, %50, %cst_26 [0] : vector<2x128xi32> to vector<128xi32>
    %52 = vector.shape_cast %51 : vector<128xi32> to vector<1x128xi32>
    %c2_i32_27 = arith.constant 2 : i32
    %53 = vector.broadcast %c2_i32_27 : i32 to vector<2x128xi32>
    %54 = arith.cmpi eq, %22, %53 : vector<2x128xi32>
    %c2_i32_28 = arith.constant 2 : i32
    %55 = vector.broadcast %c2_i32_28 : i32 to vector<2x128xi32>
    %56 = arith.cmpi eq, %24, %55 : vector<2x128xi32>
    %57 = arith.andi %54, %56 : vector<2x128xi1>
    %58 = arith.extui %57 : vector<2x128xi1> to vector<2x128xi32>
    %cst_29 = arith.constant dense<0> : vector<128xi32>
    %59 = vector.multi_reduction <add>, %58, %cst_29 [0] : vector<2x128xi32> to vector<128xi32>
    %60 = vector.shape_cast %59 : vector<128xi32> to vector<1x128xi32>
    %61 = arith.extui %54 : vector<2x128xi1> to vector<2x128xi32>
    %cst_30 = arith.constant dense<0> : vector<128xi32>
    %62 = vector.multi_reduction <add>, %61, %cst_30 [0] : vector<2x128xi32> to vector<128xi32>
    %63 = vector.shape_cast %62 : vector<128xi32> to vector<1x128xi32>
    %64 = arith.extui %56 : vector<2x128xi1> to vector<2x128xi32>
    %cst_31 = arith.constant dense<0> : vector<128xi32>
    %65 = vector.multi_reduction <add>, %64, %cst_31 [0] : vector<2x128xi32> to vector<128xi32>
    %66 = vector.shape_cast %65 : vector<128xi32> to vector<1x128xi32>
    %c3_i32_32 = arith.constant 3 : i32
    %67 = vector.broadcast %c3_i32_32 : i32 to vector<2x128xi32>
    %68 = arith.cmpi eq, %22, %67 : vector<2x128xi32>
    %c3_i32_33 = arith.constant 3 : i32
    %69 = vector.broadcast %c3_i32_33 : i32 to vector<2x128xi32>
    %70 = arith.cmpi eq, %24, %69 : vector<2x128xi32>
    %71 = arith.andi %68, %70 : vector<2x128xi1>
    %72 = arith.extui %71 : vector<2x128xi1> to vector<2x128xi32>
    %cst_34 = arith.constant dense<0> : vector<128xi32>
    %73 = vector.multi_reduction <add>, %72, %cst_34 [0] : vector<2x128xi32> to vector<128xi32>
    %74 = vector.shape_cast %73 : vector<128xi32> to vector<1x128xi32>
    %75 = arith.extui %68 : vector<2x128xi1> to vector<2x128xi32>
    %cst_35 = arith.constant dense<0> : vector<128xi32>
    %76 = vector.multi_reduction <add>, %75, %cst_35 [0] : vector<2x128xi32> to vector<128xi32>
    %77 = vector.shape_cast %76 : vector<128xi32> to vector<1x128xi32>
    %78 = arith.extui %70 : vector<2x128xi1> to vector<2x128xi32>
    %cst_36 = arith.constant dense<0> : vector<128xi32>
    %79 = vector.multi_reduction <add>, %78, %cst_36 [0] : vector<2x128xi32> to vector<128xi32>
    %80 = vector.shape_cast %79 : vector<128xi32> to vector<1x128xi32>
    %c0_37 = arith.constant 0 : index
    %c0_38 = arith.constant 0 : index
    %c0_39 = arith.constant 0 : index
    %81 = vector.load %arg4[%c0_37, %c0_38, %c0_39] : memref<1x4x128xi32, #tpu.memory_space<vmem>>, vector<1x4x128xi32>
    %82 = vector.shape_cast %81 : vector<1x4x128xi32> to vector<4x128xi32>
    %83 = tpu.concatenate %32, %46, %60, %74 in 0 : vector<1x128xi32>, vector<1x128xi32>, vector<1x128xi32>, vector<1x128xi32> -> vector<4x128xi32>
    %84 = arith.addi %82, %83 : vector<4x128xi32>
    %c0_40 = arith.constant 0 : index
    %c0_41 = arith.constant 0 : index
    %c0_42 = arith.constant 0 : index
    %85 = vector.load %arg4[%c0_40, %c0_41, %c0_42] : memref<1x4x128xi32, #tpu.memory_space<vmem>>, vector<1x4x128xi32>
    %86 = vector.shape_cast %85 : vector<1x4x128xi32> to vector<4x128xi32>
    %87 = vector.shape_cast %84 : vector<4x128xi32> to vector<1x4x128xi32>
    tpu.vector_store %arg4[%c0_40, %c0_41, %c0_42], %87 {strides = array<i32>} : memref<1x4x128xi32, #tpu.memory_space<vmem>>, vector<1x4x128xi32>,
    %c0_43 = arith.constant 0 : index
    %c0_44 = arith.constant 0 : index
    %c0_45 = arith.constant 0 : index
    %88 = vector.load %arg5[%c0_43, %c0_44, %c0_45] : memref<1x4x128xi32, #tpu.memory_space<vmem>>, vector<1x4x128xi32>
    %89 = vector.shape_cast %88 : vector<1x4x128xi32> to vector<4x128xi32>
    %90 = tpu.concatenate %35, %49, %63, %77 in 0 : vector<1x128xi32>, vector<1x128xi32>, vector<1x128xi32>, vector<1x128xi32> -> vector<4x128xi32>
    %91 = arith.addi %89, %90 : vector<4x128xi32>
    %c0_46 = arith.constant 0 : index
    %c0_47 = arith.constant 0 : index
    %c0_48 = arith.constant 0 : index
    %92 = vector.load %arg5[%c0_46, %c0_47, %c0_48] : memref<1x4x128xi32, #tpu.memory_space<vmem>>, vector<1x4x128xi32>
    %93 = vector.shape_cast %92 : vector<1x4x128xi32> to vector<4x128xi32>
    %94 = vector.shape_cast %91 : vector<4x128xi32> to vector<1x4x128xi32>
    tpu.vector_store %arg5[%c0_46, %c0_47, %c0_48], %94 {strides = array<i32>} : memref<1x4x128xi32, #tpu.memory_space<vmem>>, vector<1x4x128xi32>,
    %c0_49 = arith.constant 0 : index
    %c0_50 = arith.constant 0 : index
    %c0_51 = arith.constant 0 : index
    %95 = vector.load %arg6[%c0_49, %c0_50, %c0_51] : memref<1x4x128xi32, #tpu.memory_space<vmem>>, vector<1x4x128xi32>
    %96 = vector.shape_cast %95 : vector<1x4x128xi32> to vector<4x128xi32>
    %97 = tpu.concatenate %38, %52, %66, %80 in 0 : vector<1x128xi32>, vector<1x128xi32>, vector<1x128xi32>, vector<1x128xi32> -> vector<4x128xi32>
    %98 = arith.addi %96, %97 : vector<4x128xi32>
    %c0_52 = arith.constant 0 : index
    %c0_53 = arith.constant 0 : index
    %c0_54 = arith.constant 0 : index
    %99 = vector.load %arg6[%c0_52, %c0_53, %c0_54] : memref<1x4x128xi32, #tpu.memory_space<vmem>>, vector<1x4x128xi32>
    %100 = vector.shape_cast %99 : vector<1x4x128xi32> to vector<4x128xi32>
    %101 = vector.shape_cast %98 : vector<4x128xi32> to vector<1x4x128xi32>
    tpu.vector_store %arg6[%c0_52, %c0_53, %c0_54], %101 {strides = array<i32>} : memref<1x4x128xi32, #tpu.memory_space<vmem>>, vector<1x4x128xi32>,
    return
  }
  func.func @transform_0(%arg0: i32, %arg1: i32) -> (i32, i32, i32, i32) {
    %c0_i32 = arith.constant 0 : i32
    %c0_i32_0 = arith.constant 0 : i32
    %c0_i32_1 = arith.constant 0 : i32
    return %arg0, %c0_i32, %arg1, %c0_i32_0 : i32, i32, i32, i32
  }
  func.func @transform_1(%arg0: i32, %arg1: i32) -> (i32, i32, i32, i32) {
    %c0_i32 = arith.constant 0 : i32
    %c0_i32_0 = arith.constant 0 : i32
    %c0_i32_1 = arith.constant 0 : i32
    return %arg0, %c0_i32, %arg1, %c0_i32_0 : i32, i32, i32, i32
  }
  func.func @transform_2(%arg0: i32, %arg1: i32) -> (i32, i32, i32) {
    %c0_i32 = arith.constant 0 : i32
    %c0_i32_0 = arith.constant 0 : i32
    %c0_i32_1 = arith.constant 0 : i32
    return %arg0, %c0_i32, %c0_i32_0 : i32, i32, i32
  }
  func.func @transform_3(%arg0: i32, %arg1: i32) -> (i32, i32, i32) {
    %c0_i32 = arith.constant 0 : i32
    %c0_i32_0 = arith.constant 0 : i32
    %c0_i32_1 = arith.constant 0 : i32
    return %arg0, %c0_i32, %c0_i32_0 : i32, i32, i32
  }
  func.func @transform_4(%arg0: i32, %arg1: i32) -> (i32, i32, i32) {
    %c0_i32 = arith.constant 0 : i32
    %c0_i32_0 = arith.constant 0 : i32
    %c0_i32_1 = arith.constant 0 : i32
    return %arg0, %c0_i32, %c0_i32_0 : i32, i32, i32
  }
}

</mosaic_0001>

<bundles_post_ra>
// kernel: tpu_custom_call.1
= control target key start
LH: loop header
LB: loop body
LE: loop exit
PB: predicated region body
PF: predicated region fallthrough
CT: control target
= control target key end

     0   :  { %s1283_s0 = inlined_call_operand.hbm [shape: f32[2,4,2,128], index: 0, kind: input, shape index: {}]   ;;  %s1284_s1 = inlined_call_operand.hbm [shape: s32[2,1,2,128], index: 1, kind: input, shape index: {}]   ;;  %s1285_s2 = inlined_call_operand.hbm [shape: s32[2,4,128], index: 2, kind: output, shape index: {0}]   ;;  %s1286_s3 = inlined_call_operand.hbm [shape: s32[2,4,128], index: 3, kind: output, shape index: {1}]   ;;  %s1287_s4 = inlined_call_operand.hbm [shape: s32[2,4,128], index: 4, kind: output, shape index: {2}]  }
   0x1   :  { %1290 = sst [smem:[#allocation16_spill]] %s1283_s0 }
   0x2   :  { %10 = vsyncpa [#allocation3], 0 }
   0x3   :  { %12 = vsyncpa [#allocation3 + $0x1], 0 }
   0x4   :  { %13 = vsyncpa [#allocation6], 0 }
   0x5   :  { %15 = vsyncpa [#allocation6 + $0x1], 0 }
   0x6   :  { %16 = vsyncpa [#allocation4], 0 }
   0x7   :  { %18 = vsyncpa [#allocation4 + $0x1], 0 }
   0x8   :  { %19 = vsyncpa [#allocation9], 0 }
   0x9   :  { %21 = vsyncpa [#allocation9 + $0x1], 0  ;;  %s1009_s15 = smov 0   ;;  %s1011_s16 = smov 0  }
   0xa   :  { %s1013_s17 = smov 0   ;;  %s1015_s18 = smov 0  }
   0xb   :  { %s1017_s19 = smov 0   ;;  %s1019_s20 = smov 0  }
   0xc LB: > { %s1040_s21 = sadd.s32 4294967295, %s979_s20   ;;  %s1288_s22 = sadd.s32 4294967294, %s979_s20   ;;  %s979_s20 = sphi %s1019_s20, %s27_s20   ;;  %s975_s19 = sphi %s1017_s19, %s1304_s19   ;;  %s971_s18 = sphi %s1015_s18, %s1303_s18   ;;  %s967_s17 = sphi %s1013_s17, %s1302_s17   ;;  %s963_s16 = sphi %s1011_s16, %s1301_s16   ;;  %s959_s15 = sphi %s1009_s15, %s1300_s15  }
   0xd   : > { %s39_s23 = sadd.s32 1, %s975_s19  ;;  %s48_s24 = sadd.s32 1, %s967_s17 }
   0xe   : > { %p41_p0 = scmp.ge.s32.totalorder %s39_s23, 2  ;;  %p55_p1 = scmp.ne.s32.totalorder %s967_s17, %s963_s16 }
   0xf   : > { %p56_p2 = scmp.eq.s32.totalorder %s979_s20, 0  ;;  %p61_p3 = scmp.ne.s32.totalorder %s963_s16, %s959_s15 }
  0x10   : > { %s1306_s23 = smov (%p41_p0, %s39_s23), 0  ;;  %p62_p5 = scmp.eq.s32.totalorder %s1040_s21, 0 }
  0x11   : > { %1291 = sst [smem:[#allocation15_spill]] %s1306_s23  ;;  %p1052_p4 = por %p56_p2, %p55_p1 }
  0x12   : > { %s43_s26 = ssub.s32 %s975_s19, %s1306_s23  ;;  %p113_p6 = scmp.eq.s32.totalorder %s1040_s21, 1 }
  0x13   : > { %p46_p7 = scmp.eq.s32.totalorder %s43_s26, 0  ;;  %p1060_p8 = por %p62_p5, %p61_p3 }
  0x14   : > { %p1064_p9 = por %p113_p6, %p55_p1  ;;  %p119_p10 = scmp.eq.s32.totalorder %s1288_s22, 1 }
  0x15   : > { %s1071_s29 = scalar_select %p46_p7, %s967_s17, %s48_s24  }
  0x16   : > { %p1073_p11 = por %p119_p10, %p61_p3  ;;  %p669_p12 = scmp.ge.s32.totalorder %s979_s20, 2 }
  0x17   : > { %p720_p13 = scmp.lt.s32.totalorder %s979_s20, 2  ;;  %s191_s5 = sand.u32 1, %s967_s17  }
  0x18   : > { %s670_s6 = sshll.u32 %s191_s5, 3  ;;  %s692_s7 = sshll.u32 %s975_s19, 3 }
  0x19   : > { %s1296_s0 = sld [smem:[#allocation16_spill]]  ;;  %s195_s11 = scalar_lea.vmem [#allocation2], %s670_s6 }
  0x1a   : > { %s204_s12 = sshll.u32 %s195_s11, 4  ;;  %p1086_p0 = pnand %p720_p13, %p1052_p4  ;;  %s205_s12 = int_to_ptr.vmem [resolvable:$true] %s204_s12 }
  0x1b   : > { %p675_p1 = scmp.ge.s32.totalorder %s979_s20, 1  ;;  %s192_s24 = scalar_lea.sflag [#allocation3], %s191_s5 }
  0x1c   : > { %s981_s26 = smov 32   ;;  %s982_s22 = smov 2  }
  0x1d   : > { %p232_p2 = scmp.lt.s32.totalorder %s979_s20, 3  ;;  %s674_s6 = sshll.u32 %s975_s19, 1 }
  0x1e   : > { %s223_s25 = scalar_lea.hbm %s1284_s1, %s674_s6  ;;  %s215_s23 = scalar_lea.sflag [#allocation6], %s191_s5 }
  0x1f   : > { %s201_s10 = scalar_lea.hbm %s1296_s0, %s692_s7  ;;  %s673_s7 = sshll.u32 %s191_s5, 1 }
  0x20   : > { %s202_s13 = sshll.u32 %s201_s10, 4  ;;  %p233_p3 = pnand %p675_p1, %p232_p2  ;;  %s203_s13 = int_to_ptr.hbm [resolvable:$true] %s202_s13 }
  0x21   : > { %706 = dma.hbm_to_vmem [thread:$0]  (!%p1086_p0), %s203_s13, 128, %s205_s12, %s192_s24, %s981_s26, %s981_s26, %s982_s22  }
  0x22   : > { %s218_s10 = scalar_lea.vmem [#allocation5], %s673_s7  ;;  %s225_s0 = sshll.u32 %s223_s25, 4  ;;  %s226_s0 = int_to_ptr.hbm [resolvable:$true] %s225_s0 }
  0x23   : > { %s227_s11 = sshll.u32 %s218_s10, 4  ;;  %236 = sbr.rel (%p233_p3) target bundleno = 103 (0x67), region = 28  ;;  %s228_s11 = int_to_ptr.vmem [resolvable:$true] %s227_s11 }
  0x24   : > { %709 = dma.hbm_to_vmem [thread:$0]  (!%p1086_p0), %s226_s0, 32, %s228_s11, %s215_s23  }
  0x25   : > { %s1101_s22 = sand.u32 (!%p233_p3), 1, %s963_s16  }
  0x26   : > { %s676_s12 = sshll.u32 (!%p233_p3), %s1101_s22, 3  ;;  %s239_s13 = scalar_lea.sflag (!%p233_p3), [#allocation3], %s1101_s22 }
  0x27   : > { %s242_s24 = scalar_lea.vmem (!%p233_p3), [#allocation2], %s676_s12 }
  0x28   : > { %942 = dma.done.wait (%p1060_p8), %s239_s13, 128  }
  0x29   : > { %944 = vsyncadd (%p1060_p8), %s239_s13, 4294967168  ;;  %s677_s5 = sshll.u32 %s1101_s22, 1  ;;  %s249_s0 = scalar_lea.sflag [#allocation6], %s1101_s22 }
  0x2a   : > { %s252_s23 = scalar_lea.vmem [#allocation5], %s677_s5 }
  0x2b   : > { %946 = dma.done.wait (%p1060_p8), %s249_s0, 32  }
  0x2c   : > { %948 = vsyncadd (%p1060_p8), %s249_s0, 4294967264  ;;  %s678_s14 = sshll.u32 %s1101_s22, 2  ;;  %v983_v0 = vmov 0   ;;  %v300_v1 = vld [vmem:[%s242_s24] sm:$0x3]  ;;  %vm320_vm1 = vcmask 1041408  }
  0x2d   : > { %s1116_s26 = scalar_lea.vmem [#allocation8], %s678_s14  ;;  %s1120_s7 = scalar_lea.vmem [#allocation7], %s678_s14  ;;  %v681_v2 = vld [vmem:[%s242_s24 + $0x2] sm:$0x3]  ;;  %v682_v3 = vld [vmem:[%s242_s24 + $0x4] sm:$0x3] }
  0x2e   : > { %298 = vst [vmem:[%s1116_s26] sm:$0xf] %v983_v0  ;;  %s1124_s6 = scalar_lea.vmem [#allocation10], %s678_s14  ;;  %vm303_vm0 = vcmp.gt.f32.partialorder %v681_v2, %v300_v1  ;;  %v315_v4 = vld [vmem:[%s252_s23] sm:$0x3]  ;;  %v683_v7 = vld [vmem:[%s242_s24 + $0x6] sm:$0x3] }
  0x2f   : > { %297 = vst [vmem:[%s1120_s7] sm:$0xf] %v983_v0  ;;  %v304_v5 = vsel %vm303_vm0, %v681_v2, %v300_v1  ;;  %v305_v6 = vsel %vm303_vm0, 1, %v983_v0  ;;  %vm317_vm2 = vcmp.eq.s32.totalorder %v315_v4, 0  ;;  %vm345_vm3 = vcmp.eq.s32.totalorder %v315_v4, 1  ;;  %s1172_s27 = sshll.u32 %s971_s18, 2  ;;  %s450_s25 = sand.u32 1, %s1040_s21  }
  0x30   : > { %299 = vst [vmem:[%s1124_s6] sm:$0xf] %v983_v0  ;;  %vm308_vm4 = vcmp.gt.f32.partialorder %v682_v3, %v304_v5  ;;  %vm372_vm5 = vcmp.eq.s32.totalorder %v315_v4, 2  ;;  %vm399_vm6 = vcmp.eq.s32.totalorder %v315_v4, 3  ;;  %v336_v8 = vsel %vm317_vm2, 1, %v983_v0  ;;  %s480_s18 = scalar_lea.hbm %s1286_s3, %s1172_s27  ;;  %s482_s10 = sshll.u32 %s1116_s26, 4  ;;  %s1194_s10 = int_to_ptr.vmem [resolvable:$true] %s482_s10 }
  0x31   : > { %v309_v9 = vsel %vm308_vm4, %v682_v3, %v304_v5  ;;  %v310_v10 = vsel %vm308_vm4, 2, %v305_v6  ;;  %v337_v11 = vsel %vm320_vm1, %v336_v8, 0  ;;  %v363_v12 = vsel %vm345_vm3, 1, %v983_v0  ;;  %s1186_s11 = sshll.u32 %s480_s18, 4  ;;  %s466_s24 = scalar_lea.hbm %s1285_s2, %s1172_s27  ;;  %s485_s11 = int_to_ptr.hbm [resolvable:$true] %s1186_s11 }
  0x32   : > { %vm313_vm7 = vcmp.gt.f32.partialorder %v683_v7, %v309_v9  ;;  %v338_v13 = vrot.slane %v337_v11, 4  ;;  %v1135_v14 = vsel %vm320_vm1, %v363_v12, 0  ;;  %v390_v15 = vsel %vm372_vm5, 1, %v983_v0  ;;  %s468_s5 = sshll.u32 %s1120_s7, 4  ;;  %s1203_s0 = sshll.u32 %s466_s24, 4  ;;  %s469_s5 = int_to_ptr.vmem [resolvable:$true] %s468_s5  ;;  %s471_s0 = int_to_ptr.hbm [resolvable:$true] %s1203_s0 }
  0x33   : > { %v314_v16 = vsel %vm313_vm7, 3, %v310_v10  ;;  %v365_v17 = vrot.slane %v1135_v14, 4  ;;  %v1141_v18 = vsel %vm320_vm1, %v390_v15, 0  ;;  %v1145_v19 = vsel %vm399_vm6, 1, %v983_v0  ;;  %s1209_s23 = scalar_lea.sflag [#allocation9], %s450_s25  ;;  %s847_s14 = sshra.s32 %s485_s11, 4  ;;  %s848_s14 = int_to_ptr.hbm [resolvable:$true] %s847_s14 }
  0x34   : > { %vm316_vm8 = vcmp.eq.s32.totalorder %v314_v16, 0  ;;  %vm344_vm9 = vcmp.eq.s32.totalorder %v314_v16, 1  ;;  %vm371_vm10 = vcmp.eq.s32.totalorder %v314_v16, 2  ;;  %vm398_vm11 = vcmp.eq.s32.totalorder %v314_v16, 3  ;;  %s849_s8 = scalar_lea.hbm %s848_s14, 4  ;;  %s853_s18 = scalar_lea.hbm %s1286_s3, 8 }
  0x35   : > { %v328_v20 = vsel %vm316_vm8, 1, %v983_v0  ;;  %v355_v21 = vsel %vm344_vm9, 1, %v983_v0  ;;  %v382_v22 = vsel %vm371_vm10, 1, %v983_v0  ;;  %v409_v23 = vsel %vm398_vm11, 1, %v983_v0  ;;  %vm318_vm12 = vmand %vm316_vm8, %vm317_vm2  ;;  %v433_v12 = vld [vmem:[%s1116_s26] sm:$0xf]  ;;  %p850_p4 = scmp.ne.s32.totalorder %s848_s14, %s849_s8  ;;  %p854_p7 = scmp.lt.s32.totalorder %s848_s14, %s1286_s3 }
  0x36   : > { %v329_v24 = vsel %vm320_vm1, %v328_v20, 0  ;;  %v356_v25 = vsel %vm320_vm1, %v355_v21, 0  ;;  %v383_v26 = vsel %vm320_vm1, %v382_v22, 0  ;;  %v410_v27 = vsel %vm320_vm1, %v409_v23, 0  ;;  %vm346_vm13 = vmand %vm344_vm9, %vm345_vm3  ;;  %p855_p8 = scmp.lt.s32.totalorder %s853_s18, %s849_s8 }
  0x37   : > { %v330_v28 = vrot.slane %v329_v24, 4  ;;  %v357_v29 = vrot.slane %v356_v25, 4  ;;  %v384_v30 = vrot.slane %v383_v26, 4  ;;  %v411_v31 = vrot.slane %v410_v27, 4  ;;  %vm373_vm14 = vmand %vm371_vm10, %vm372_vm5  ;;  %p851_p5 = pnand %p850_p4, %p1064_p9 }
  0x38   : > { %vm426_vm15 = vcmask 1040384   ;;  %v319_v32 = vsel %vm318_vm12, 1, %v983_v0  ;;  %v347_v33 = vsel %vm346_vm13, 1, %v983_v0  ;;  %v374_v34 = vsel %vm373_vm14, 1, %v983_v0  ;;  %vm400_vm0 = vmand %vm398_vm11, %vm399_vm6  ;;  %p856_p10 = por %p855_p8, %p854_p7 }
  0x39   : > { %v339_v35 = vadd.s32 %v338_v13, %v337_v11  ;;  %v331_v36 = vadd.s32 %v330_v28, %v329_v24  ;;  %v358_v37 = vadd.s32 %v357_v29, %v356_v25  ;;  %v385_v38 = vadd.s32 %v384_v30, %v383_v26  ;;  %p852_p6 = pneg %p851_p5 }
  0x3a   : > { %v412_v39 = vadd.s32 %v411_v31, %v410_v27  ;;  %vm429_vm2 = vcmask 1042432   ;;  %v321_v40 = vsel %vm320_vm1, %v319_v32, 0  ;;  %v348_v41 = vsel %vm320_vm1, %v347_v33, 0 }
  0x3b   : > { %v375_v42 = vsel %vm320_vm1, %v374_v34, 0  ;;  %v401_v43 = vsel %vm400_vm0, 1, %v983_v0  ;;  %v332_v44 = vrot.slane %v331_v36, 2  ;;  %v359_v45 = vrot.slane %v358_v37, 2  ;;  %p857_p13 = pnand %p856_p10, %p852_p6 }
  0x3c   : > { %v386_v46 = vrot.slane %v385_v38, 2  ;;  %v413_v47 = vrot.slane %v412_v39, 2  ;;  %v322_v48 = vrot.slane %v321_v40, 4  ;;  %v349_v49 = vrot.slane %v348_v41, 4 }
  0x3d   : > { %v376_v50 = vrot.slane %v375_v42, 4  ;;  %v402_v51 = vsel %vm320_vm1, %v401_v43, 0  ;;  %v333_v52 = vadd.s32 %v332_v44, %v331_v36  ;;  %v360_v53 = vadd.s32 %v359_v45, %v358_v37 }
  0x3e   : > { %v387_v54 = vadd.s32 %v386_v46, %v385_v38  ;;  %v414_v55 = vadd.s32 %v413_v47, %v412_v39  ;;  %v323_v56 = vadd.s32 %v322_v48, %v321_v40  ;;  %v350_v57 = vadd.s32 %v349_v49, %v348_v41  ;;  %v425_v38 = vld [vmem:[%s1120_s7] sm:$0xf] }
  0x3f   : > { %v377_v58 = vadd.s32 %v376_v50, %v375_v42  ;;  %v403_v59 = vrot.slane %v402_v51, 4  ;;  %v334_v60 = vrot.slane %v333_v52, 1  ;;  %v361_v61 = vrot.slane %v360_v53, 1 }
  0x40   : > { %v388_v62 = vrot.slane %v387_v54, 1  ;;  %v415_v63 = vrot.slane %v414_v55, 1  ;;  %v324_v0 = vrot.slane %v323_v56, 2  ;;  %v351_v1 = vrot.slane %v350_v57, 2 }
  0x41   : > { %v378_v2 = vrot.slane %v377_v58, 2  ;;  %v404_v3 = vadd.s32 %v403_v59, %v402_v51  ;;  %v335_v4 = vadd.s32 %v334_v60, %v333_v52  ;;  %v362_v5 = vadd.s32 %v361_v61, %v360_v53 }
  0x42   : > { %v389_v6 = vadd.s32 %v388_v62, %v387_v54  ;;  %v416_v7 = vadd.s32 %v415_v63, %v414_v55  ;;  %v325_v8 = vadd.s32 %v324_v0, %v323_v56  ;;  %v352_v9 = vadd.s32 %v351_v1, %v350_v57 }
  0x43   : > { %v379_v10 = vadd.s32 %v378_v2, %v377_v58  ;;  %v405_v11 = vrot.slane %v404_v3, 2  ;;  %v434_v13 = vsel %vm426_vm15, %v335_v4, %v362_v5  ;;  %v340_v15 = vrot.slane %v339_v35, 2 }
  0x44   : > { %v366_v16 = vadd.s32 %v365_v17, %v1135_v14  ;;  %v392_v20 = vrot.slane %v1141_v18, 4  ;;  %v435_v21 = vsel %vm320_vm1, %v434_v13, %v389_v6  ;;  %v326_v22 = vrot.slane %v325_v8, 1 }
  0x45   : > { %v353_v23 = vrot.slane %v352_v9, 1  ;;  %v380_v24 = vrot.slane %v379_v10, 1  ;;  %v436_v25 = vsel %vm429_vm2, %v435_v21, %v416_v7  ;;  %v406_v26 = vadd.s32 %v405_v11, %v404_v3 }
  0x46   : > { %v341_v27 = vadd.s32 %v340_v15, %v339_v35  ;;  %v367_v28 = vrot.slane %v366_v16, 2  ;;  %v437_v14 = vadd.s32 %v436_v25, %v433_v12  ;;  %v327_v17 = vadd.s32 %v326_v22, %v325_v8 }
  0x47   : > { %v354_v29 = vadd.s32 %v353_v23, %v352_v9  ;;  %v381_v30 = vadd.s32 %v380_v24, %v379_v10  ;;  %v407_v31 = vrot.slane %v406_v26, 1  ;;  %v393_v34 = vadd.s32 %v392_v20, %v1141_v18 }
  0x48   : > { %v342_v32 = vrot.slane %v341_v27, 1  ;;  %v368_v33 = vadd.s32 %v367_v28, %v366_v16  ;;  %438 = vst [vmem:[%s1116_s26] sm:$0xf] %v437_v14  ;;  %v418_v36 = vsel %vm320_vm1, %v1145_v19, 0 }
  0x49   : > { %v427_v35 = vsel %vm426_vm15, %v327_v17, %v354_v29  ;;  %v408_v37 = vadd.s32 %v407_v31, %v406_v26 }
  0x4a   : > { %v428_v39 = vsel %vm320_vm1, %v427_v35, %v381_v30  ;;  %v369_v40 = vrot.slane %v368_v33, 1 }
  0x4b   : > { %860 = shalt.err (!%p857_p13)
}
  0x4c   : > { %698 = dma.vmem_to_hbm [thread:$0]  (%p1064_p9), %s1194_s10, 64, %s485_s11, %s1209_s23   ;;  %v394_v18 = vrot.slane %v393_v34, 2  ;;  %v419_v19 = vrot.slane %v418_v36, 4  ;;  %v430_v41 = vsel %vm429_vm2, %v428_v39, %v408_v37  ;;  %v343_v42 = vadd.s32 %v342_v32, %v341_v27 }
  0x4d   : > { %v431_v43 = vadd.s32 %v430_v41, %v425_v38  ;;  %v370_v44 = vadd.s32 %v369_v40, %v368_v33  ;;  %s446_s21 = scalar_lea.sflag [#allocation4], %s1101_s22  ;;  %s875_s25 = sshra.s32 %s471_s0, 4  ;;  %s876_s25 = int_to_ptr.hbm [resolvable:$true] %s875_s25 }
  0x4e   : > { %v395_v45 = vadd.s32 %v394_v18, %v393_v34  ;;  %v420_v46 = vadd.s32 %v419_v19, %v418_v36  ;;  %s877_s24 = scalar_lea.hbm %s876_s25, 4  ;;  %s881_s14 = scalar_lea.hbm %s1285_s2, 8 }
  0x4f   : > { %432 = vst [vmem:[%s1120_s7] sm:$0xf] %v431_v43  ;;  %p878_p0 = scmp.ne.s32.totalorder %s876_s25, %s877_s24  ;;  %p882_p3 = scmp.lt.s32.totalorder %s876_s25, %s1285_s2 }
  0x50   : > { %v396_v47 = vrot.slane %v395_v45, 1  ;;  %v421_v48 = vrot.slane %v420_v46, 2  ;;  %p883_p4 = scmp.lt.s32.totalorder %s881_s14, %s877_s24 }
  0x51   : > { %p879_p1 = pnand %p878_p0, %p1064_p9 }
  0x52   : > { %p884_p5 = por %p883_p4, %p882_p3 }
  0x53   : > { %p880_p2 = pneg %p879_p1 }
  0x55   : > { %p885_p6 = pnand %p884_p5, %p880_p2 }
  0x57   : > { %888 = shalt.err (!%p885_p6)
}
  0x58   : > { %697 = dma.vmem_to_hbm [thread:$0]  (%p1064_p9), %s469_s5, 64, %s471_s0, %s446_s21   ;;  %v397_v49 = vadd.s32 %v396_v47, %v395_v45  ;;  %v422_v50 = vadd.s32 %v421_v48, %v420_v46  ;;  %v440_v51 = vsel %vm426_vm15, %v343_v42, %v370_v44  ;;  %v439_v55 = vld [vmem:[%s1124_s6] sm:$0xf] }
  0x59   : > { %s494_s9 = scalar_lea.hbm %s1287_s4, %s1172_s27  ;;  %s496_s18 = sshll.u32 %s1124_s6, 4  ;;  %s497_s18 = int_to_ptr.vmem [resolvable:$true] %s496_s18 }
  0x5a   : > { %v423_v52 = vrot.slane %v422_v50, 1  ;;  %v441_v53 = vsel %vm320_vm1, %v440_v51, %v397_v49  ;;  %s498_s12 = sshll.u32 %s494_s9, 4  ;;  %s909_s21 = scalar_lea.hbm %s1287_s4, 8  ;;  %s499_s12 = int_to_ptr.hbm [resolvable:$true] %s498_s12 }
  0x5b   : > { %s903_s5 = sshra.s32 %s499_s12, 4  ;;  %s904_s5 = int_to_ptr.hbm [resolvable:$true] %s903_s5 }
  0x5c   : > { %v424_v54 = vadd.s32 %v423_v52, %v422_v50  ;;  %s905_s0 = scalar_lea.hbm %s904_s5, 4  ;;  %p910_p13 = scmp.lt.s32.totalorder %s904_s5, %s1287_s4 }
  0x5d   : > { %p906_p7 = scmp.ne.s32.totalorder %s904_s5, %s905_s0  ;;  %p911_p0 = scmp.lt.s32.totalorder %s909_s21, %s905_s0 }
  0x5e   : > { %v442_v56 = vsel %vm429_vm2, %v441_v53, %v424_v54 }
  0x5f   : > { %v443_v57 = vadd.s32 %v442_v56, %v439_v55  ;;  %p907_p8 = pnand %p906_p7, %p1064_p9  ;;  %p912_p1 = por %p911_p0, %p910_p13 }
  0x61   : > { %444 = vst [vmem:[%s1124_s6] sm:$0xf] %v443_v57  ;;  %p908_p10 = pneg %p907_p8 }
  0x63   : > { %p913_p2 = pnand %p912_p1, %p908_p10 }
  0x65   : > { %916 = shalt.err (!%p913_p2)
}
  0x66   : > { %699 = dma.vmem_to_hbm [thread:$0]  (%p1064_p9), %s497_s18, 64, %s499_s12, %s1209_s23  }
  0x67 PF: > { %s510_s6 = sand.u32 1, %s959_s15   ;;  %p711_p3 = pnand %p669_p12, %p1073_p11 }
  0x68   : > { %s511_s10 = scalar_lea.sflag [#allocation4], %s510_s6 }
  0x69   : > { %p712_p4 = pneg %p711_p3 }
  0x6b   : > { %950 = dma.done.wait (%p712_p4), %s511_s10, 64  }
  0x6c   : > { %952 = vsyncadd (%p712_p4), %s511_s10, 4294967232  ;;  %s1298_s11 = sadd.s32 4294967294, %s979_s20  }
  0x6d   : > { %s520_s14 = sand.u32 1, %s1298_s11  }
  0x6e   : > { %s521_s8 = scalar_lea.sflag [#allocation9], %s520_s14 }
  0x6f   : > { %954 = dma.done.wait (%p712_p4), %s521_s8, 128  }
  0x70   : > { %956 = vsyncadd (%p712_p4), %s521_s8, 4294967168  ;;  %s27_s20 = sadd.s32 1, %s979_s20   ;;  %s1299_s28 = sld [smem:[#allocation15_spill]] }
  0x71   : > { %p24_p9 = scmp.ge.s32.totalorder %s27_s20, 4   ;;  %s1300_s15 = smov %s963_s16 }
  0x72   : > { %s1301_s16 = smov %s967_s17  ;;  %s1302_s17 = smov %s1071_s29 }
  0x73   : > { %s1303_s18 = smov %s975_s19  ;;  %26 = sbr.rel (!%p24_p9) target bundleno = 12 (0xc), region = 125 }
  0x76   : > { %s1304_s19 = smov %s1299_s28 }
  0x78   :  { %537 = vsyncpa [#allocation3], 1 }
  0x79   :  { %539 = vsyncpa [#allocation3 + $0x1], 1 }
  0x7a   :  { %540 = vsyncpa [#allocation6], 1 }
  0x7b   :  { %542 = vsyncpa [#allocation6 + $0x1], 1 }
  0x7c   :  { %543 = vsyncpa [#allocation4], 1 }
  0x7d   :  { %545 = vsyncpa [#allocation4 + $0x1], 1 }
  0x7e   :  { %546 = vsyncpa [#allocation9], 1 }
  0x7f   :  { %548 = vsyncpa [#allocation9 + $0x1], 1 }

</bundles_post_ra>
